<compile_context>
chip_gen: v6e
topology: v6e:2x2x1
jax: 0.10.0
libtpu: 0.0.40
codegen_flags: <defaults>
</compile_context>

<pallas_src>
import functools

import jax
import jax.numpy as jnp
from jax.experimental import pallas as pl
from jax.experimental.pallas import tpu as pltpu


def _round_up(n, m):
    return ((n + m - 1) // m) * m


def mlp_kernel(x_ref, w1_ref, b1_ref, w2_ref, b2_ref, w3_ref, b3_ref, o_ref):
    cdt = w1_ref.dtype  # matmul input dtype (bf16 in production, f32 for debug)
    # In-kernel cast of x (f32 HBM read; cast hides under DMA on the VPU).
    x = x_ref[...].astype(cdt)
    # fc1 + ReLU (MXU matmul, f32 accumulation; epilogue kept in f32)
    h1 = jnp.dot(x, w1_ref[...], preferred_element_type=jnp.float32)
    h1 = jnp.maximum(h1 + b1_ref[...], 0.0)
    # fc2 + ReLU
    h2 = jnp.dot(h1.astype(cdt), w2_ref[...], preferred_element_type=jnp.float32)
    h2 = jnp.maximum(h2 + b2_ref[...], 0.0)
    # fc3 (raw logits, no activation)
    logits = jnp.dot(h2.astype(cdt), w3_ref[...], preferred_element_type=jnp.float32)
    logits = logits + b3_ref[...]
    # Store only the C real logit columns (out last dim == full array dim C);
    # masked vst in VMEM, but the HBM writeback is 14x smaller than padded-C f32.
    o_ref[...] = logits[:, : o_ref.shape[1]].astype(o_ref.dtype)


def prepare_params(params, *, use_bf16=True):
    """Pad + cast weights/biases ONCE (outside the hot path).

    Zero-padding of weights and biases is exact through bias-add + ReLU;
    padded logit columns are never stored (kernel slices them off).
    Returns (prepared_arrays, num_classes).
    """
    w1, b1, w2, b2, w3, b3 = params
    D, H1 = w1.shape
    H2 = w2.shape[1]
    C = w3.shape[1]
    cdt = jnp.bfloat16 if use_bf16 else jnp.float32

    Dp, H1p, H2p, Cp = (_round_up(d, 128) for d in (D, H1, H2, C))

    w1p = jnp.pad(w1, ((0, Dp - D), (0, H1p - H1))).astype(cdt)
    w2p = jnp.pad(w2, ((0, H1p - H1), (0, H2p - H2))).astype(cdt)
    w3p = jnp.pad(w3, ((0, H2p - H2), (0, Cp - C))).astype(cdt)
    b1p = jnp.pad(b1, ((0, 0), (0, H1p - H1))).astype(jnp.float32)
    b2p = jnp.pad(b2, ((0, 0), (0, H2p - H2))).astype(jnp.float32)
    b3p = jnp.pad(b3, ((0, 0), (0, Cp - C))).astype(jnp.float32)

    prepared = tuple(jax.device_put(a) for a in (w1p, b1p, w2p, b2p, w3p, b3p))
    return prepared, C


@functools.partial(jax.jit, static_argnames=("num_classes", "tile_b"))
def multilabel_forward(x, prepared, *, num_classes, tile_b=1024):
    """x: [B, input_size] float32 -> logits [B, num_classes] float32."""
    w1p, b1p, w2p, b2p, w3p, b3p = prepared
    B, D = x.shape
    Dp = w1p.shape[0]
    H1p = w2p.shape[0]
    H2p = w3p.shape[0]
    Cp = w3p.shape[1]
    C = num_classes

    # Batch tile: big enough to amortize per-grid-step overhead (~0.35 us),
    # but keep >= 2 grid steps when the batch is large so both v7x TensorCores
    # get work on the single "parallel" batch axis.
    Bmin = _round_up(B, 8)
    tile = min(tile_b, Bmin)
    if tile == Bmin and tile >= 256:
        tile = _round_up((tile + 1) // 2, 8)   # split whole-batch tile in two
    tile = max(8, _round_up(tile, 8))
    Bp = _round_up(B, tile)

    # x stays f32 (no wrapper-side cast pass); pad only if needed.
    xp = x
    if Bp != B or Dp != D:
        xp = jnp.pad(x, ((0, Bp - B), (0, Dp - D)))

    grid = (Bp // tile,)

    out = pl.pallas_call(
        mlp_kernel,
        out_shape=jax.ShapeDtypeStruct((Bp, C), jnp.float32),
        grid_spec=pltpu.PrefetchScalarGridSpec(
            num_scalar_prefetch=0,
            grid=grid,
            in_specs=[
                pl.BlockSpec((tile, Dp), lambda i: (i, 0)),   # x tile (streamed, f32)
                pl.BlockSpec((Dp, H1p), lambda i: (0, 0)),    # w1 (grid-invariant)
                pl.BlockSpec((1, H1p), lambda i: (0, 0)),     # b1
                pl.BlockSpec((H1p, H2p), lambda i: (0, 0)),   # w2
                pl.BlockSpec((1, H2p), lambda i: (0, 0)),     # b2
                pl.BlockSpec((H2p, Cp), lambda i: (0, 0)),    # w3
                pl.BlockSpec((1, Cp), lambda i: (0, 0)),      # b3
            ],
            out_specs=pl.BlockSpec((tile, C), lambda i: (i, 0)),  # unpadded-C store
        ),
        compiler_params=pltpu.CompilerParams(
            dimension_semantics=("parallel",),  # batch-parallel (megacore on v7x)
        ),
    )(xp, w1p, b1p, w2p, b2p, w3p, b3p)

    if Bp != B:
        out = out[:B]
    return out


def init_params(key, input_size, num_classes):
    """PyTorch-Linear-style init: U(-1/sqrt(fan_in), 1/sqrt(fan_in))."""
    def linear(key, fan_in, fan_out):
        kw, kb = jax.random.split(key)
        bound = 1.0 / jnp.sqrt(fan_in)
        w = jax.random.uniform(kw, (fan_in, fan_out), jnp.float32, -bound, bound)
        b = jax.random.uniform(kb, (1, fan_out), jnp.float32, -bound, bound)
        return w, b

    k1, k2, k3 = jax.random.split(key, 3)
    w1, b1 = linear(k1, input_size, 128)
    w2, b2 = linear(k2, 128, 64)
    w3, b3 = linear(k3, 64, num_classes)
    return (w1, b1, w2, b2, w3, b3)


def reference_forward(x, params):
    w1, b1, w2, b2, w3, b3 = params
    h = jnp.maximum(x @ w1 + b1, 0.0)
    h = jnp.maximum(h @ w2 + b2, 0.0)
    return h @ w3 + b3


if __name__ == "__main__":
    # TODO(synk): the upstream codebert/SentenceTransformer embedding producer
    # (get_embedding) is outside this module; x here stands in for its output.
    num_classes = 9          # len(label_dict)
    input_size = 256         # embedding dim (small stand-in for codebert's 768)
    batch = 8

    key = jax.random.PRNGKey(0)
    kx, kp = jax.random.split(key)
    x = jax.random.normal(kx, (batch, input_size), jnp.float32)
    params = init_params(kp, input_size, num_classes)

    ref = reference_forward(x, params)

    # f32 path: bit-accurate check of the fused kernel / padding / masked-C store.
    prep_f32, C = prepare_params(params, use_bf16=False)
    logits_f32 = jax.block_until_ready(
        multilabel_forward(x, prep_f32, num_classes=C))
    assert logits_f32.shape == (batch, num_classes)
    assert jnp.allclose(logits_f32, ref, atol=1e-4, rtol=1e-4)

    # bf16 matmul-input path (production config): looser tolerance.
    prep_bf16, C = prepare_params(params, use_bf16=True)
    logits = jax.block_until_ready(
        multilabel_forward(x, prep_bf16, num_classes=C))
    assert logits.shape == (batch, num_classes)
    assert jnp.allclose(logits, ref, atol=3e-2, rtol=3e-2)

    print("KERNEL_OK")
</pallas_src>

<mosaic_0001>
module attributes {stable_mosaic.version = 11 : i64} {
  func.func @mlp_kernel(%arg0: i32, %arg1: memref<8x256xf32, #tpu.memory_space<vmem>>, %arg2: memref<256x128xf32, #tpu.memory_space<vmem>>, %arg3: memref<1x128xf32, #tpu.memory_space<vmem>>, %arg4: memref<128x128xf32, #tpu.memory_space<vmem>>, %arg5: memref<1x128xf32, #tpu.memory_space<vmem>>, %arg6: memref<128x128xf32, #tpu.memory_space<vmem>>, %arg7: memref<1x128xf32, #tpu.memory_space<vmem>>, %arg8: memref<8x9xf32, #tpu.memory_space<vmem>>) attributes {dimension_semantics = [#tpu.dimension_semantics<parallel>], iteration_bounds = array<i64: 1>, scalar_prefetch = 0 : i64, scratch_operands = 0 : i64, tpu.core_type = #tpu.core_type<tc>, window_params = [{transform_indices = @transform_0, window_bounds = array<i64: 8, 256>}, {pipeline_mode = #tpu.pipeline_mode<synchronous>, transform_indices = @transform_1, window_bounds = array<i64: 256, 128>}, {pipeline_mode = #tpu.pipeline_mode<synchronous>, transform_indices = @transform_2, window_bounds = array<i64: 1, 128>}, {pipeline_mode = #tpu.pipeline_mode<synchronous>, transform_indices = @transform_3, window_bounds = array<i64: 128, 128>}, {pipeline_mode = #tpu.pipeline_mode<synchronous>, transform_indices = @transform_4, window_bounds = array<i64: 1, 128>}, {pipeline_mode = #tpu.pipeline_mode<synchronous>, transform_indices = @transform_5, window_bounds = array<i64: 128, 128>}, {pipeline_mode = #tpu.pipeline_mode<synchronous>, transform_indices = @transform_6, window_bounds = array<i64: 1, 128>}, {transform_indices = @transform_7, window_bounds = array<i64: 8, 9>}]} {
    %c0 = arith.constant 0 : index
    %c0_0 = arith.constant 0 : index
    %0 = vector.load %arg1[%c0, %c0_0] : memref<8x256xf32, #tpu.memory_space<vmem>>, vector<8x256xf32>
    %c0_1 = arith.constant 0 : index
    %c0_2 = arith.constant 0 : index
    %1 = vector.load %arg2[%c0_1, %c0_2] : memref<256x128xf32, #tpu.memory_space<vmem>>, vector<256x128xf32>
    %cst = arith.constant dense<0.000000e+00> : vector<8x128xf32>
    %2 = tpu.matmul %0, %1, %cst {dimension_numbers = #tpu.dot_dimension_numbers<[1], [0], [0], [1], [0, 0, 1, 1], [], []>} : vector<8x256xf32>, vector<256x128xf32>, vector<8x128xf32> -> vector<8x128xf32>
    %c0_3 = arith.constant 0 : index
    %c0_4 = arith.constant 0 : index
    %3 = vector.load %arg3[%c0_3, %c0_4] : memref<1x128xf32, #tpu.memory_space<vmem>>, vector<1x128xf32>
    %4 = vector.broadcast %3 : vector<1x128xf32> to vector<8x128xf32>
    %5 = arith.addf %2, %4 : vector<8x128xf32>
    %cst_5 = arith.constant 0.000000e+00 : f32
    %6 = vector.broadcast %cst_5 : f32 to vector<8x128xf32>
    %7 = arith.maximumf %5, %6 : vector<8x128xf32>
    %c0_6 = arith.constant 0 : index
    %c0_7 = arith.constant 0 : index
    %8 = vector.load %arg4[%c0_6, %c0_7] : memref<128x128xf32, #tpu.memory_space<vmem>>, vector<128x128xf32>
    %cst_8 = arith.constant dense<0.000000e+00> : vector<8x128xf32>
    %9 = tpu.matmul %7, %8, %cst_8 {dimension_numbers = #tpu.dot_dimension_numbers<[1], [0], [0], [1], [0, 0, 1, 1], [], []>} : vector<8x128xf32>, vector<128x128xf32>, vector<8x128xf32> -> vector<8x128xf32>
    %c0_9 = arith.constant 0 : index
    %c0_10 = arith.constant 0 : index
    %10 = vector.load %arg5[%c0_9, %c0_10] : memref<1x128xf32, #tpu.memory_space<vmem>>, vector<1x128xf32>
    %11 = vector.broadcast %10 : vector<1x128xf32> to vector<8x128xf32>
    %12 = arith.addf %9, %11 : vector<8x128xf32>
    %cst_11 = arith.constant 0.000000e+00 : f32
    %13 = vector.broadcast %cst_11 : f32 to vector<8x128xf32>
    %14 = arith.maximumf %12, %13 : vector<8x128xf32>
    %c0_12 = arith.constant 0 : index
    %c0_13 = arith.constant 0 : index
    %15 = vector.load %arg6[%c0_12, %c0_13] : memref<128x128xf32, #tpu.memory_space<vmem>>, vector<128x128xf32>
    %cst_14 = arith.constant dense<0.000000e+00> : vector<8x128xf32>
    %16 = tpu.matmul %14, %15, %cst_14 {dimension_numbers = #tpu.dot_dimension_numbers<[1], [0], [0], [1], [0, 0, 1, 1], [], []>} : vector<8x128xf32>, vector<128x128xf32>, vector<8x128xf32> -> vector<8x128xf32>
    %c0_15 = arith.constant 0 : index
    %c0_16 = arith.constant 0 : index
    %17 = vector.load %arg7[%c0_15, %c0_16] : memref<1x128xf32, #tpu.memory_space<vmem>>, vector<1x128xf32>
    %18 = vector.broadcast %17 : vector<1x128xf32> to vector<8x128xf32>
    %19 = arith.addf %16, %18 : vector<8x128xf32>
    %20 = vector.extract_strided_slice %19 {offsets = [0, 0], sizes = [8, 9], strides = [1, 1]} : vector<8x128xf32> to vector<8x9xf32>
    %c0_17 = arith.constant 0 : index
    %c0_18 = arith.constant 0 : index
    %21 = vector.load %arg8[%c0_17, %c0_18] : memref<8x9xf32, #tpu.memory_space<vmem>>, vector<8x9xf32>
    tpu.vector_store %arg8[%c0_17, %c0_18], %20 {strides = array<i32>} : memref<8x9xf32, #tpu.memory_space<vmem>>, vector<8x9xf32>,
    return
  }
  func.func @transform_0(%arg0: i32) -> (i32, i32) {
    %c0_i32 = arith.constant 0 : i32
    %c0_i32_0 = arith.constant 0 : i32
    return %arg0, %c0_i32 : i32, i32
  }
  func.func @transform_1(%arg0: i32) -> (i32, i32) {
    %c0_i32 = arith.constant 0 : i32
    %c0_i32_0 = arith.constant 0 : i32
    %c0_i32_1 = arith.constant 0 : i32
    return %c0_i32, %c0_i32_0 : i32, i32
  }
  func.func @transform_2(%arg0: i32) -> (i32, i32) {
    %c0_i32 = arith.constant 0 : i32
    %c0_i32_0 = arith.constant 0 : i32
    %c0_i32_1 = arith.constant 0 : i32
    return %c0_i32, %c0_i32_0 : i32, i32
  }
  func.func @transform_3(%arg0: i32) -> (i32, i32) {
    %c0_i32 = arith.constant 0 : i32
    %c0_i32_0 = arith.constant 0 : i32
    %c0_i32_1 = arith.constant 0 : i32
    return %c0_i32, %c0_i32_0 : i32, i32
  }
  func.func @transform_4(%arg0: i32) -> (i32, i32) {
    %c0_i32 = arith.constant 0 : i32
    %c0_i32_0 = arith.constant 0 : i32
    %c0_i32_1 = arith.constant 0 : i32
    return %c0_i32, %c0_i32_0 : i32, i32
  }
  func.func @transform_5(%arg0: i32) -> (i32, i32) {
    %c0_i32 = arith.constant 0 : i32
    %c0_i32_0 = arith.constant 0 : i32
    %c0_i32_1 = arith.constant 0 : i32
    return %c0_i32, %c0_i32_0 : i32, i32
  }
  func.func @transform_6(%arg0: i32) -> (i32, i32) {
    %c0_i32 = arith.constant 0 : i32
    %c0_i32_0 = arith.constant 0 : i32
    %c0_i32_1 = arith.constant 0 : i32
    return %c0_i32, %c0_i32_0 : i32, i32
  }
  func.func @transform_7(%arg0: i32) -> (i32, i32) {
    %c0_i32 = arith.constant 0 : i32
    %c0_i32_0 = arith.constant 0 : i32
    return %arg0, %c0_i32 : i32, i32
  }
}

</mosaic_0001>

<bundles_post_ra>
// kernel: multilabel_forward.1
= control target key start
LH: loop header
LB: loop body
LE: loop exit
PB: predicated region body
PF: predicated region fallthrough
CT: control target
= control target key end

     0   :  { %12 = vsyncpa [#allocation3], 0  ;;  %s773_s0 = inlined_call_operand.hbm [shape: f32[8,256], index: 0, kind: input, shape index: {}]   ;;  %s774_s1 = inlined_call_operand.hbm [shape: f32[256,128], index: 1, kind: input, shape index: {}]   ;;  %s775_s2 = inlined_call_operand.vmem [shape: f32[1,128], index: 2, kind: input, shape index: {}]   ;;  %s776_s3 = inlined_call_operand.hbm [shape: f32[128,128], index: 3, kind: input, shape index: {}]   ;;  %s777_s4 = inlined_call_operand.vmem [shape: f32[1,128], index: 4, kind: input, shape index: {}]   ;;  %s778_s5 = inlined_call_operand.hbm [shape: f32[128,128], index: 5, kind: input, shape index: {}]   ;;  %s779_s6 = inlined_call_operand.vmem [shape: f32[1,128], index: 6, kind: input, shape index: {}]   ;;  %s780_s7 = inlined_call_operand.hbm [shape: f32[8,9], index: 7, kind: output, shape index: {}]  }
   0x1   :  { %13 = vsyncpa [#allocation6], 0 }
   0x2   :  { %14 = vsyncpa [#allocation9], 0 }
   0x3   :  { %15 = vsyncpa [#allocation4], 0  ;;  %s657_s24 = smov [#allocation5]  }
   0x4   :  { %s31_s25 = sshll.u32 %s657_s24, 4  ;;  %s32_s25 = int_to_ptr.vmem [resolvable:$true] %s31_s25 }
   0x5   :  { %s557_s26 = scalar_lea.vmem %s32_s25, 4096  ;;  %p562_p1 = scmp.lt.s32.totalorder %s32_s25, %s32_s25 }
   0x6   :  { %p558_p0 = scmp.ne.s32.totalorder %s32_s25, %s557_s26  ;;  %p563_p2 = scmp.lt.s32.totalorder %s557_s26, %s557_s26 }
   0x8   :  { %p564_p3 = por %p563_p2, %p562_p1 }
   0xa   :  { %p565_p4 = pnand %p564_p3, %p558_p0 }
   0xc   :  { %568 = shalt.err (!%p565_p4)
}
   0xd   :  { %s658_s27 = smov 128   ;;  %s659_s28 = smov 8  }
   0xe   :  { %37 = dma.hbm_to_vmem [thread:$0]  %s774_s1, 4096, %s32_s25, [#allocation6], %s658_s27, %s658_s27, %s659_s28  }
   0xf   :  { %s660_s8 = smov [#allocation2]   ;;  %s661_s10 = smov [#allocation7]  }
  0x10   :  { %s22_s9 = sshll.u32 %s660_s8, 4  ;;  %s45_s11 = sshll.u32 %s661_s10, 4  ;;  %s23_s9 = int_to_ptr.vmem [resolvable:$true] %s22_s9  ;;  %s46_s11 = int_to_ptr.vmem [resolvable:$true] %s45_s11 }
  0x11   :  { %s577_s12 = scalar_lea.vmem %s23_s9, 256  ;;  %p582_p6 = scmp.lt.s32.totalorder %s23_s9, %s23_s9 }
  0x12   :  { %p578_p5 = scmp.ne.s32.totalorder %s23_s9, %s577_s12  ;;  %p583_p7 = scmp.lt.s32.totalorder %s577_s12, %s577_s12 }
  0x14   :  { %p584_p8 = por %p583_p7, %p582_p6 }
  0x16   :  { %p585_p9 = pnand %p584_p8, %p578_p5 }
  0x18   :  { %588 = shalt.err (!%p585_p9)
}
  0x19   :  { %25 = dma.hbm_to_vmem [thread:$0]  %s773_s0, 256, %s23_s9, [#allocation3]  }
  0x1a   :  { %s597_s15 = scalar_lea.vmem %s46_s11, 2048  ;;  %p602_p11 = scmp.lt.s32.totalorder %s46_s11, %s46_s11 }
  0x1b   :  { %p598_p10 = scmp.ne.s32.totalorder %s46_s11, %s597_s15  ;;  %p603_p12 = scmp.lt.s32.totalorder %s597_s15, %s597_s15 }
  0x1d   :  { %p604_p13 = por %p603_p12, %p602_p11 }
  0x1f   :  { %p605_p0 = pnand %p604_p13, %p598_p10 }
  0x21   :  { %608 = shalt.err (!%p605_p0)
}
  0x22   :  { %51 = dma.hbm_to_vmem [thread:$0]  %s776_s3, 2048, %s46_s11, [#allocation6], %s658_s27, %s658_s27, %s659_s28  }
  0x23   :  { %s662_s17 = smov [#allocation8]  }
  0x24   :  { %s59_s18 = sshll.u32 %s662_s17, 4  ;;  %s60_s18 = int_to_ptr.vmem [resolvable:$true] %s59_s18 }
  0x25   :  { %s617_s19 = scalar_lea.vmem %s60_s18, 2048  ;;  %p622_p2 = scmp.lt.s32.totalorder %s60_s18, %s60_s18 }
  0x26   :  { %p618_p1 = scmp.ne.s32.totalorder %s60_s18, %s617_s19  ;;  %p623_p3 = scmp.lt.s32.totalorder %s617_s19, %s617_s19 }
  0x28   :  { %p624_p4 = por %p623_p3, %p622_p2 }
  0x2a   :  { %p625_p5 = pnand %p624_p4, %p618_p1 }
  0x2c   :  { %628 = shalt.err (!%p625_p5)
}
  0x2d   :  { %65 = dma.hbm_to_vmem [thread:$0]  %s778_s5, 2048, %s60_s18, [#allocation9], %s658_s27, %s658_s27, %s659_s28  }
  0x2e   :  { %649 = dma.done.wait [#allocation3], 256  }
  0x2f   :  { %650 = vsyncadd [#allocation3], 4294967040 }
  0x30   :  { %651 = dma.done.wait [#allocation6], 6144  }
  0x31   :  { %652 = vsyncadd [#allocation6], 4294961152 }
  0x32   :  { %653 = dma.done.wait [#allocation9], 2048  }
  0x33   :  { %654 = vsyncadd [#allocation9], 4294965248  ;;  %v663_v0 = vmov 0.0   ;;  %v113_v1 = vld [vmem:[#allocation5 + $0xf8] sm:$0xff]  ;;  %v112_v3 = vld [vmem:[#allocation5 + $0xf0] sm:$0xff]  ;;  %vm664_vm0 = vmmov 0  }
  0x34   :  { %470 = vmatprep.subr.mxu1 %v663_v0  ;;  %v97_v2 = vld [vmem:[#allocation5 + $0x78] sm:$0xff]  ;;  %401 = vmatprep.subr.mxu0 %v113_v1  ;;  %v96_v4 = vld [vmem:[#allocation5 + $0x70] sm:$0xff]  ;;  %v111_v5 = vld [vmem:[#allocation5 + $0xe8] sm:$0xff]  ;;  %s665_s24 = smov [#allocation10]   ;;  %vm379_vm1 = vcmask 72704  }
  0x35   :  { %402 = vmatpush3.msra.mxu0 %v97_v2  ;;  %v95_v6 = vld [vmem:[#allocation5 + $0x68] sm:$0xff]  ;;  %v110_v7 = vld [vmem:[#allocation5 + $0xe0] sm:$0xff]  ;;  %v109_v9 = vld [vmem:[#allocation5 + $0xd8] sm:$0xff]  ;;  %502 = vmatprep.mubr.msk.f32.mxu1 %vm664_vm0, %v663_v0  ;;  %s387_s25 = sshll.u32 %s665_s24, 4  ;;  %s388_s25 = int_to_ptr.vmem [resolvable:$true] %s387_s25 }
  0x36   :  { %403 = vmatprep.subr.mxu0 %v112_v3  ;;  %v94_v8 = vld [vmem:[#allocation5 + $0x60] sm:$0xff]  ;;  %v93_v10 = vld [vmem:[#allocation5 + $0x58] sm:$0xff]  ;;  %v108_v11 = vld [vmem:[#allocation5 + $0xd0] sm:$0xff]  ;;  %s629_s26 = scalar_lea.vmem %s388_s25, 128  ;;  %p634_p7 = scmp.lt.s32.totalorder %s388_s25, %s388_s25 }
  0x37   :  { %404 = vmatpush3.msra.mxu0 %v96_v4  ;;  %v92_v12 = vld [vmem:[#allocation5 + $0x50] sm:$0xff]  ;;  %v107_v13 = vld [vmem:[#allocation5 + $0xc8] sm:$0xff]  ;;  %v81_v14 = vld [vmem:[#allocation2 + $0x8] sm:$0xff]  ;;  %p630_p6 = scmp.ne.s32.totalorder %s388_s25, %s629_s26  ;;  %p635_p8 = scmp.lt.s32.totalorder %s629_s26, %s629_s26 }
  0x38   :  { %405 = vmatprep.subr.mxu0 %v111_v5  ;;  %v91_v15 = vld [vmem:[#allocation5 + $0x48] sm:$0xff]  ;;  %185 = vmatprep.mubr.f32.mxu0 %v81_v14  ;;  %v207_v16 = vld [vmem:[#allocation7 + $0x78] sm:$0xff]  ;;  %v206_v17 = vld [vmem:[#allocation7 + $0x70] sm:$0xff] }
  0x39   :  { %406 = vmatpush3.msra.mxu0 %v95_v6  ;;  %v106_v18 = vld [vmem:[#allocation5 + $0xc0] sm:$0xff]  ;;  %471 = vmatpush3.msra.mxu1 %v207_v16  ;;  %v205_v20 = vld [vmem:[#allocation7 + $0x68] sm:$0xff]  ;;  %v105_v21 = vld [vmem:[#allocation5 + $0xb8] sm:$0xff]  ;;  %p636_p9 = por %p635_p8, %p634_p7 }
  0x3a   :  { %407 = vmatprep.subr.mxu0 %v110_v7  ;;  %v90_v19 = vld [vmem:[#allocation5 + $0x40] sm:$0xff]  ;;  %472 = vmatprep.subr.mxu1 %v663_v0  ;;  %v89_v22 = vld [vmem:[#allocation5 + $0x38] sm:$0xff]  ;;  %v104_v24 = vld [vmem:[#allocation5 + $0xb0] sm:$0xff] }
  0x3b   :  { %408 = vmatpush3.msra.mxu0 %v94_v8  ;;  %473 = vmatpush3.msra.mxu1 %v206_v17  ;;  %v204_v23 = vld [vmem:[#allocation7 + $0x60] sm:$0xff]  ;;  %v88_v25 = vld [vmem:[#allocation5 + $0x30] sm:$0xff]  ;;  %v203_v26 = vld [vmem:[#allocation7 + $0x58] sm:$0xff]  ;;  %p637_p10 = pnand %p636_p9, %p630_p6 }
  0x3c   :  { %409 = vmatprep.subr.mxu0 %v109_v9  ;;  %474 = vmatprep.subr.mxu1 %v663_v0  ;;  %v103_v27 = vld [vmem:[#allocation5 + $0xa8] sm:$0xff]  ;;  %v202_v29 = vld [vmem:[#allocation7 + $0x50] sm:$0xff]  ;;  %v102_v30 = vld [vmem:[#allocation5 + $0xa0] sm:$0xff] }
  0x3d   :  { %410 = vmatpush3.msra.mxu0 %v93_v10  ;;  %475 = vmatpush3.msra.mxu1 %v205_v20  ;;  %v87_v28 = vld [vmem:[#allocation5 + $0x28] sm:$0xff]  ;;  %v86_v31 = vld [vmem:[#allocation5 + $0x20] sm:$0xff]  ;;  %v101_v33 = vld [vmem:[#allocation5 + $0x98] sm:$0xff] }
  0x3e   :  { %411 = vmatprep.subr.mxu0 %v108_v11  ;;  %476 = vmatprep.subr.mxu1 %v663_v0  ;;  %v201_v32 = vld [vmem:[#allocation7 + $0x48] sm:$0xff]  ;;  %v85_v34 = vld [vmem:[#allocation5 + $0x18] sm:$0xff]  ;;  %v200_v35 = vld [vmem:[#allocation7 + $0x40] sm:$0xff] }
  0x3f   :  { %412 = vmatpush3.msra.mxu0 %v92_v12  ;;  %477 = vmatpush3.msra.mxu1 %v204_v23  ;;  %v100_v36 = vld [vmem:[#allocation5 + $0x90] sm:$0xff]  ;;  %v199_v38 = vld [vmem:[#allocation7 + $0x38] sm:$0xff]  ;;  %v99_v39 = vld [vmem:[#allocation5 + $0x88] sm:$0xff] }
  0x40   :  { %413 = vmatprep.subr.mxu0 %v107_v13  ;;  %478 = vmatprep.subr.mxu1 %v663_v0  ;;  %v84_v37 = vld [vmem:[#allocation5 + $0x10] sm:$0xff]  ;;  %v83_v40 = vld [vmem:[#allocation5 + $0x8] sm:$0xff]  ;;  %v98_v42 = vld [vmem:[#allocation5 + $0x80] sm:$0xff] }
  0x41   :  { %414 = vmatpush3.msra.mxu0 %v91_v15  ;;  %479 = vmatpush3.msra.mxu1 %v203_v26  ;;  %v198_v41 = vld [vmem:[#allocation7 + $0x30] sm:$0xff]  ;;  %v82_v43 = vld [vmem:[#allocation5] sm:$0xff]  ;;  %v197_v44 = vld [vmem:[#allocation7 + $0x28] sm:$0xff] }
  0x42   :  { %415 = vmatprep.subr.mxu0 %v106_v18  ;;  %480 = vmatprep.subr.mxu1 %v663_v0  ;;  %v80_v45 = vld [vmem:[#allocation2] sm:$0xff]  ;;  %v196_v46 = vld [vmem:[#allocation7 + $0x20] sm:$0xff]  ;;  %v195_v47 = vld [vmem:[#allocation7 + $0x18] sm:$0xff] }
  0x43   :  { %416 = vmatpush3.msra.mxu0 %v90_v19  ;;  %481 = vmatpush3.msra.mxu1 %v202_v29  ;;  %v194_v48 = vld [vmem:[#allocation7 + $0x10] sm:$0xff]  ;;  %v193_v49 = vld [vmem:[#allocation7 + $0x8] sm:$0xff]  ;;  %v192_v50 = vld [vmem:[#allocation7] sm:$0xff] }
  0x44   :  { %417 = vmatprep.subr.mxu0 %v105_v21  ;;  %482 = vmatprep.subr.mxu1 %v663_v0  ;;  %v301_v51 = vld [vmem:[#allocation8 + $0x78] sm:$0xff]  ;;  %v300_v52 = vld [vmem:[#allocation8 + $0x70] sm:$0xff]  ;;  %v299_v53 = vld [vmem:[#allocation8 + $0x68] sm:$0xff] }
  0x45   :  { %418 = vmatpush3.msra.mxu0 %v89_v22  ;;  %483 = vmatpush3.msra.mxu1 %v201_v32  ;;  %v298_v54 = vld [vmem:[#allocation8 + $0x60] sm:$0xff]  ;;  %v297_v55 = vld [vmem:[#allocation8 + $0x58] sm:$0xff]  ;;  %v296_v56 = vld [vmem:[#allocation8 + $0x50] sm:$0xff] }
  0x46   :  { %419 = vmatprep.subr.mxu0 %v104_v24  ;;  %484 = vmatprep.subr.mxu1 %v663_v0  ;;  %v295_v57 = vld [vmem:[#allocation8 + $0x48] sm:$0xff]  ;;  %v294_v58 = vld [vmem:[#allocation8 + $0x40] sm:$0xff]  ;;  %v293_v59 = vld [vmem:[#allocation8 + $0x38] sm:$0xff] }
  0x47   :  { %420 = vmatpush3.msra.mxu0 %v88_v25  ;;  %485 = vmatpush3.msra.mxu1 %v200_v35  ;;  %v292_v60 = vld [vmem:[#allocation8 + $0x30] sm:$0xff]  ;;  %v291_v61 = vld [vmem:[#allocation8 + $0x28] sm:$0xff]  ;;  %v290_v62 = vld [vmem:[#allocation8 + $0x20] sm:$0xff] }
  0x48   :  { %421 = vmatprep.subr.mxu0 %v103_v27  ;;  %486 = vmatprep.subr.mxu1 %v663_v0  ;;  %v289_v63 = vld [vmem:[#allocation8 + $0x18] sm:$0xff]  ;;  %v398_v2 = vld [vmem:[%s775_s2] ss:$0 sm:$0xff]  ;;  %v287_v8 = vld [vmem:[#allocation8 + $0x8] sm:$0xff] }
  0x49   :  { %422 = vmatpush3.msra.mxu0 %v87_v28  ;;  %487 = vmatpush3.msra.mxu1 %v199_v38  ;;  %v288_v7 = vld [vmem:[#allocation8 + $0x10] sm:$0xff]  ;;  %v286_v9 = vld [vmem:[#allocation8] sm:$0xff] }
  0x4a   :  { %423 = vmatprep.subr.mxu0 %v102_v30  ;;  %488 = vmatprep.subr.mxu1 %v663_v0  ;;  %v399_v10 = vld [vmem:[%s777_s4] ss:$0 sm:$0xff] }
  0x4b   :  { %424 = vmatpush3.msra.mxu0 %v86_v31  ;;  %489 = vmatpush3.msra.mxu1 %v198_v41  ;;  %v400_v15 = vld [vmem:[%s779_s6] ss:$0 sm:$0xff] }
  0x4c   :  { %425 = vmatprep.subr.mxu0 %v101_v33  ;;  %490 = vmatprep.subr.mxu1 %v663_v0 }
  0x4d   :  { %426 = vmatpush3.msra.mxu0 %v85_v34  ;;  %491 = vmatpush3.msra.mxu1 %v197_v44 }
  0x4e   :  { %427 = vmatprep.subr.mxu0 %v100_v36  ;;  %492 = vmatprep.subr.mxu1 %v663_v0 }
  0x4f   :  { %428 = vmatpush3.msra.mxu0 %v84_v37  ;;  %493 = vmatpush3.msra.mxu1 %v196_v46 }
  0x50   :  { %429 = vmatprep.subr.mxu0 %v99_v39  ;;  %494 = vmatprep.subr.mxu1 %v663_v0 }
  0x51   :  { %430 = vmatpush3.msra.mxu0 %v83_v40  ;;  %495 = vmatpush3.msra.mxu1 %v195_v47 }
  0x52   :  { %431 = vmatprep.subr.mxu0 %v98_v42  ;;  %496 = vmatprep.subr.mxu1 %v663_v0 }
  0x53   :  { %432 = vmatpush3.msra.mxu0 %v82_v43  ;;  %497 = vmatpush3.msra.mxu1 %v194_v48 }
  0x54   :  { %186 = vmatmul.mubr.f32.vlgmr.msra.gmra.mxu0 %v80_v45  ;;  %505 = vmatprep.subr.mxu0 %v663_v0 }
  0x55   :  { %498 = vmatprep.subr.mxu1 %v663_v0  ;;  %537 = vmatprep.mubr.msk.f32.mxu0 %vm664_vm0, %v663_v0 }
  0x56   :  { %499 = vmatpush3.msra.mxu1 %v193_v49  ;;  %506 = vmatpush3.msra.mxu0 %v301_v51 }
  0x57   :  { %500 = vmatprep.subr.mxu1 %v663_v0  ;;  %507 = vmatprep.subr.mxu0 %v663_v0 }
  0x58   :  { %501 = vmatpush3.msra.mxu1 %v192_v50  ;;  %508 = vmatpush3.msra.mxu0 %v300_v52 }
  0x59   :  { %509 = vmatprep.subr.mxu0 %v663_v0 }
  0x5a   :  { %510 = vmatpush3.msra.mxu0 %v299_v53 }
  0x5b   :  { %511 = vmatprep.subr.mxu0 %v663_v0 }
  0x5c   :  { %512 = vmatpush3.msra.mxu0 %v298_v54 }
  0x5d   :  { %513 = vmatprep.subr.mxu0 %v663_v0 }
  0x5e   :  { %514 = vmatpush3.msra.mxu0 %v297_v55 }
  0x5f   :  { %515 = vmatprep.subr.mxu0 %v663_v0 }
  0x60   :  { %516 = vmatpush3.msra.mxu0 %v296_v56 }
  0x61   :  { %517 = vmatprep.subr.mxu0 %v663_v0 }
  0x62   :  { %518 = vmatpush3.msra.mxu0 %v295_v57 }
  0x63   :  { %519 = vmatprep.subr.mxu0 %v663_v0 }
  0x64   :  { %520 = vmatpush3.msra.mxu0 %v294_v58 }
  0x65   :  { %521 = vmatprep.subr.mxu0 %v663_v0 }
  0x66   :  { %522 = vmatpush3.msra.mxu0 %v293_v59 }
  0x67   :  { %523 = vmatprep.subr.mxu0 %v663_v0 }
  0x68   :  { %524 = vmatpush3.msra.mxu0 %v292_v60 }
  0x69   :  { %525 = vmatprep.subr.mxu0 %v663_v0 }
  0x6a   :  { %526 = vmatpush3.msra.mxu0 %v291_v61 }
  0x6b   :  { %527 = vmatprep.subr.mxu0 %v663_v0 }
  0x6c   :  { %528 = vmatpush3.msra.mxu0 %v290_v62 }
  0x6d   :  { %529 = vmatprep.subr.mxu0 %v663_v0 }
  0x6e   :  { %530 = vmatpush3.msra.mxu0 %v289_v63 }
  0x6f   :  { %531 = vmatprep.subr.mxu0 %v663_v0 }
  0x70   :  { %532 = vmatpush3.msra.mxu0 %v288_v7 }
  0x71   :  { %533 = vmatprep.subr.mxu0 %v663_v0 }
  0x72   :  { %534 = vmatpush3.msra.mxu0 %v287_v8 }
  0x73   :  { %535 = vmatprep.subr.mxu0 %v663_v0 }
  0x74   :  { %536 = vmatpush3.msra.mxu0 %v286_v9 }
 0x114   :  { %v433_v1 = vpop.f32.mrf.mxu0 }
 0x116   :  { %v434_v3 = vpop.f32.mrf.mxu0 }
 0x117   :  { %v435_v4 = vadd.f32 %v434_v3, %v433_v1 }
 0x119   :  { %v188_v5 = vadd.f32 %v435_v4, %v398_v2 }
 0x11b   :  { %v191_v6 = vmax.f32 %v188_v5, 0.0 }
 0x11d   :  { %503 = vmatmul.mubr.f32.vlgmr.msra.gmra.mxu1 %v191_v6 }
 0x1dd   :  { %v281_v11 = vpop.f32.mrf.mxu1 }
 0x1de   :  { %v282_v12 = vadd.f32 %v399_v10, %v281_v11 }
 0x1df   :  { %v504_v13 = vpop.f32.mrf.mxu1 }
 0x1e0   :  { %v285_v14 = vmax.f32 %v282_v12, 0.0 }
 0x1e2   :  { %538 = vmatmul.mubr.f32.vlgmr.msra.gmra.mxu0 %v285_v14 }
 0x2a2   :  { %v375_v16 = vpop.f32.mrf.mxu0 }
 0x2a3   :  { %v376_v0 = vadd.f32 %v400_v15, %v375_v16 }
 0x2a4   :  { %v539_v17 = vpop.f32.mrf.mxu0 }
 0x2a5   :  { %380 = vst.msk [vmem:[#allocation10] sm:$0xff] %vm379_vm1, %v376_v0 }
 0x2a6   :  { %640 = shalt.err (!%p637_p10)
}
 0x2a7   :  { %390 = dma.vmem_to_hbm [thread:$0]  %s388_s25, 128, %s780_s7, [#allocation4]  }
 0x2a8   :  { %655 = dma.done.wait [#allocation4], 128  }
 0x2a9   :  { %656 = vsyncadd [#allocation4], 4294967168 }
 0x2aa   :  { %394 = vsyncpa [#allocation3], 1 }
 0x2ab   :  { %395 = vsyncpa [#allocation6], 1 }
 0x2ac   :  { %396 = vsyncpa [#allocation9], 1 }
 0x2ad   :  { %397 = vsyncpa [#allocation4], 1 }

</bundles_post_ra>
